<compile_context>
chip_gen: v6e
topology: v6e:2x2x1
jax: 0.10.0
libtpu: 0.0.40
codegen_flags: <defaults>
</compile_context>

<pallas_src>
import functools

import jax
import jax.numpy as jnp
from jax import lax
from jax.experimental import pallas as pl
from jax.experimental.pallas import tpu as pltpu


def _round_up(x, m):
    return (x + m - 1) // m * m


def _vmem_capacity_bytes():
    try:
        return int(pltpu.get_tpu_info().vmem_capacity_bytes)
    except Exception:
        return 64 * 1024 * 1024   # conservative (v7x-sized) fallback


def _patch_nce_kernel(qt_ref, k_ref, o_ref, m_sc, d_sc, lp_sc, *,
                      tq, tk, c_tiles, p_real, neg_diag, weight, padded):
    ri = pl.program_id(1)            # query (row) tile
    ci = pl.program_id(2)            # negatives (column) tile -- innermost, streamed
    ratio = tk // tq                 # static: tk is a multiple of tq
    diag_ci = ri // ratio            # the single column tile holding this row tile's diagonal
    last_ci = pl.num_programs(2) - 1

    @pl.when(ci == 0)
    def _init():
        m_sc[...] = jnp.full_like(m_sc, -jnp.inf)   # running max
        d_sc[...] = jnp.zeros_like(d_sc)            # running denominator

    # Scores for this tile of negatives: st[j, i] = <k_j, q_i> / T  (1/T folded into q).
    # Canonical MXU (m,k)x(k,n): lhs = K rows (tk, d), rhs = Q^T (d, tq); f32 accumulate.
    st = lax.dot_general(
        k_ref[0], qt_ref[0],
        dimension_numbers=(((1,), (0,)), ((), ())),
        preferred_element_type=jnp.float32)          # (tk, tq) f32

    def process(*, diag, pad):
        s = st
        if pad:
            # Zero-padded negative rows only ever exist in the last column tile.
            row_l = lax.broadcasted_iota(jnp.int32, (tk, 1), 0)
            s = jnp.where(row_l + ci * tk >= p_real, jnp.float32(-1e30), s)
        if diag:
            # This row tile's diagonal lives entirely inside this column tile.
            row0 = (ri % ratio) * tq
            rows = lax.broadcasted_iota(jnp.int32, (tk, tq), 0)
            cols = lax.broadcasted_iota(jnp.int32, (tk, tq), 1)
            is_diag = rows == cols + row0
            # l_pos_i = <q_i, k_i>/T : read the diagonal BEFORE the -10/T fill.
            lpos = jnp.sum(jnp.where(is_diag, s, 0.0), axis=0, keepdims=True)   # (1, tq)
            lp_sc[...] = lpos
            s = jnp.where(is_diag, jnp.float32(neg_diag), s)   # masked_fill_(eye, -10) / T
        # Online logsumexp over the streamed negatives axis (lane-dense (1, tq) stats).
        m_prev = m_sc[...]
        m_new = jnp.maximum(m_prev, jnp.max(s, axis=0, keepdims=True))
        d_new = d_sc[...] * jnp.exp(m_prev - m_new) + jnp.sum(
            jnp.exp(s - m_new), axis=0, keepdims=True)
        if diag:
            # Fold the positive logit (CrossEntropy class 0) into the running stats.
            m2 = jnp.maximum(m_new, lpos)
            d_new = d_new * jnp.exp(m_new - m2) + jnp.exp(lpos - m2)
            m_new = m2
        m_sc[...] = m_new
        d_sc[...] = d_new

    if c_tiles == 1:
        # Single negatives tile: it is the diag tile and (if any) the padded tile.
        process(diag=True, pad=padded)
    else:
        on_diag = ci == diag_ci
        if padded:
            on_last = ci == last_ci

            @pl.when(jnp.logical_and(on_diag, on_last))
            def _():
                process(diag=True, pad=True)

            @pl.when(jnp.logical_and(on_diag, jnp.logical_not(on_last)))
            def _():
                process(diag=True, pad=False)

            @pl.when(jnp.logical_and(jnp.logical_not(on_diag), on_last))
            def _():
                process(diag=False, pad=True)

            @pl.when(jnp.logical_and(jnp.logical_not(on_diag), jnp.logical_not(on_last)))
            def _():
                process(diag=False, pad=False)
        else:
            @pl.when(on_diag)
            def _():
                process(diag=True, pad=False)

            @pl.when(jnp.logical_not(on_diag))
            def _():
                process(diag=False, pad=False)

    @pl.when(ci == last_ci)
    def _finalize():
        lse = m_sc[...] + jnp.log(d_sc[...])
        # CrossEntropyLoss(reduction='none') with target 0, times weight.
        o_ref[0, 0] = (lse - lp_sc[...]) * jnp.float32(weight)   # lane-dense (1, tq) store


@functools.partial(
    jax.jit,
    static_argnames=("batch_size", "nce_t", "weight",
                     "nce_includes_all_negatives_from_minibatch"))
def patch_nce_loss(feat_q, feat_k, *, batch_size, nce_t=0.07, weight=1.0,
                   nce_includes_all_negatives_from_minibatch=False):
    n, dim = feat_q.shape
    g = 1 if nce_includes_all_negatives_from_minibatch else int(batch_size)
    assert n % g == 0
    p = n // g
    inv_t = 1.0 / float(nce_t)

    # ------------------------------- tiling ---------------------------------
    d_pad = _round_up(dim, 128)                 # contraction lane for the MXU (zeros are inert)
    if p > 256:
        tq = 512
    elif p > 128:
        tq = 256
    else:
        tq = 128
    p_pad = _round_up(p, tq)
    r_tiles = p_pad // tq
    # v7x: keep the 'parallel' extent (g * r_tiles) >= 2 so neither TensorCore idles.
    if g == 1 and r_tiles == 1 and tq > 128:
        tq //= 2
        p_pad = _round_up(p, tq)
        r_tiles = p_pad // tq

    phys_vmem = _vmem_capacity_bytes()
    tk_cap = 4096 if phys_vmem > 96 * 1024 * 1024 else 2048   # v5e/v6e vs v7x
    cap_m = max(1, tk_cap // tq)
    m_blk = 1
    for cand in range(min(cap_m, r_tiles), 0, -1):   # largest tq-multiple dividing p_pad
        if r_tiles % cand == 0:
            m_blk = cand
            break
    tk = m_blk * tq
    c_tiles = p_pad // tk
    padded = p_pad > p

    # ---------------------------- operand prep ------------------------------
    q = feat_q.reshape(g, p, dim)
    k = lax.stop_gradient(feat_k).reshape(g, p, dim)     # feat_k.detach(): no-op in forward
    q = (q * jnp.float32(inv_t)).astype(jnp.bfloat16)    # fold 1/T into Q; bf16 MXU operands
    k = k.astype(jnp.bfloat16)
    q = jnp.pad(q, ((0, 0), (0, p_pad - p), (0, d_pad - dim)))
    k = jnp.pad(k, ((0, 0), (0, p_pad - p), (0, d_pad - dim)))
    q_t = jnp.transpose(q, (0, 2, 1))                    # (g, d_pad, p_pad): queries on lanes

    kernel = functools.partial(
        _patch_nce_kernel, tq=tq, tk=tk, c_tiles=c_tiles, p_real=p,
        neg_diag=-10.0 * inv_t, weight=float(weight), padded=padded)

    # K is the streamed (innermost) operand; deeper buffering covers DMA jitter (v5e).
    use_deep_k = c_tiles >= 3 and hasattr(pl, "Buffered")
    k_bufs = 3 if use_deep_k else 2

    # ---------------------------- VMEM budget -------------------------------
    est = (2 * d_pad * tq * 2              # Q^T block, double-buffered, bf16
           + k_bufs * tk * d_pad * 2       # K negatives block, bf16
           + 2 * tk * tq * 4               # f32 score tile + exp temporary
           + 2 * tq * 4 + 3 * tq * 4)      # output block + (1, tq) scratch
    vmem_limit = int(min(0.75 * phys_vmem, max(32 * 1024 * 1024, 2 * est)))

    k_idx = lambda gi, ri, ci: (gi, ci, 0)
    k_spec = pl.BlockSpec((1, tk, d_pad), k_idx)
    if use_deep_k:
        try:
            k_spec = pl.BlockSpec((1, tk, d_pad), k_idx, pipeline_mode=pl.Buffered(3))
        except TypeError:
            pass   # older JAX without pipeline_mode: fall back to default double-buffering

    out = pl.pallas_call(
        kernel,
        out_shape=jax.ShapeDtypeStruct((g, r_tiles, 1, tq), jnp.float32),
        grid_spec=pltpu.PrefetchScalarGridSpec(
            num_scalar_prefetch=0,
            grid=(g, r_tiles, c_tiles),
            in_specs=[
                pl.BlockSpec((1, d_pad, tq), lambda gi, ri, ci: (gi, 0, ri)),   # Q^T
                k_spec,                                                         # K (negatives)
            ],
            out_specs=pl.BlockSpec((1, 1, 1, tq), lambda gi, ri, ci: (gi, ri, 0, 0)),
            scratch_shapes=[
                pltpu.VMEM((1, tq), jnp.float32),   # running max
                pltpu.VMEM((1, tq), jnp.float32),   # running denominator
                pltpu.VMEM((1, tq), jnp.float32),   # l_pos
            ],
        ),
        compiler_params=pltpu.CompilerParams(
            dimension_semantics=("parallel", "parallel", "arbitrary"),
            vmem_limit_bytes=vmem_limit,
        ),
    )(q_t, k)

    return out.reshape(g, p_pad)[:, :p].reshape(n)


# ------------------------------ references ----------------------------------

def _reference_f32(feat_q, feat_k, groups, nce_t, weight):
    """Pure-JAX f32 port of the PyTorch forward (the exact module semantics)."""
    n, dim = feat_q.shape
    p = n // groups
    l_pos = jnp.sum(feat_q * feat_k, axis=1, keepdims=True)
    q = feat_q.reshape(groups, p, dim)
    k = feat_k.reshape(groups, p, dim)
    l_neg = jnp.einsum("gpd,gqd->gpq", q, k, precision=lax.Precision.HIGHEST)
    eye = jnp.eye(p, dtype=bool)[None]
    l_neg = jnp.where(eye, -10.0, l_neg).reshape(n, p)
    out = jnp.concatenate([l_pos, l_neg], axis=1) / nce_t
    lse = jax.scipy.special.logsumexp(out, axis=1)
    return (lse - out[:, 0]) * weight


def _reference_matched(feat_q, feat_k, groups, nce_t, weight):
    """Same math as the kernel (bf16-rounded operands, f32 accumulation, diag l_pos)."""
    n, dim = feat_q.shape
    p = n // groups
    inv_t = 1.0 / nce_t
    qm = (feat_q * inv_t).astype(jnp.bfloat16).astype(jnp.float32)
    km = feat_k.astype(jnp.bfloat16).astype(jnp.float32)
    logits = jnp.einsum("gpd,gqd->gpq", qm.reshape(groups, p, dim),
                        km.reshape(groups, p, dim), precision=lax.Precision.HIGHEST)
    l_pos = jnp.diagonal(logits, axis1=1, axis2=2).reshape(n)
    eye = jnp.eye(p, dtype=bool)[None]
    l_neg = jnp.where(eye, -10.0 * inv_t, logits).reshape(n, p)
    allx = jnp.concatenate([l_pos[:, None], l_neg], axis=1)
    lse = jax.scipy.special.logsumexp(allx, axis=1)
    return (lse - l_pos) * weight


if __name__ == "__main__":
    nce_t = 0.07

    def check(name, loss, fq, fk, groups, weight):
        ref_m = _reference_matched(fq, fk, groups, nce_t, weight)
        ref_f = _reference_f32(fq, fk, groups, nce_t, weight)
        assert loss.shape == ref_m.shape, name
        assert bool(jnp.all(jnp.isfinite(loss))), name
        # Tight vs. the bf16-matched reference (kernel logic is exact)...
        assert jnp.allclose(loss, ref_m, atol=5e-2, rtol=1e-3), (name, "matched")
        # ...and within bf16-operand tolerance vs. the true f32 module semantics.
        assert jnp.allclose(loss, ref_f, atol=3.0, rtol=8e-2), (name, "f32")

    # ---- Config A: small shapes matching the module's typical use (batched groups) ----
    batch_size, npatches, dim = 2, 8, 32
    kq, kk = jax.random.split(jax.random.PRNGKey(0))
    fq = jax.random.normal(kq, (batch_size * npatches, dim), jnp.float32)
    fk = jax.random.normal(kk, (batch_size * npatches, dim), jnp.float32)
    loss = jax.block_until_ready(
        patch_nce_loss(fq, fk, batch_size=batch_size, nce_t=nce_t, weight=1.0))
    check("A", loss, fq, fk, batch_size, 1.0)

    # ---- Config B: all-negatives path; row tiling + P/D padding, single negatives tile ----
    np_b, dim_b = 320, 48
    kq2, kk2 = jax.random.split(jax.random.PRNGKey(1))
    fq2 = jax.random.normal(kq2, (4 * np_b, dim_b), jnp.float32)
    fk2 = jax.random.normal(kk2, (4 * np_b, dim_b), jnp.float32)
    loss2 = jax.block_until_ready(
        patch_nce_loss(fq2, fk2, batch_size=4, nce_t=nce_t, weight=0.5,
                       nce_includes_all_negatives_from_minibatch=True))
    check("B", loss2, fq2, fk2, 1, 0.5)

    # ---- Config C: large-P all-negatives; exercises the streamed negatives axis
    #      (online logsumexp), the gated diagonal / padding masks and deep K buffering ----
    np_c, dim_c = 5000, 32
    kq3, kk3 = jax.random.split(jax.random.PRNGKey(2))
    fq3 = jax.random.normal(kq3, (np_c, dim_c), jnp.float32)
    fk3 = jax.random.normal(kk3, (np_c, dim_c), jnp.float32)
    loss3 = jax.block_until_ready(
        patch_nce_loss(fq3, fk3, batch_size=1, nce_t=nce_t, weight=1.0,
                       nce_includes_all_negatives_from_minibatch=True))
    check("C", loss3, fq3, fk3, 1, 1.0)

    print("KERNEL_OK")
</pallas_src>

<mosaic_0001>
module attributes {stable_mosaic.version = 11 : i64} {
  func.func @_patch_nce_kernel(%arg0: i32, %arg1: i32, %arg2: i32, %arg3: memref<1x128x128xbf16, #tpu.memory_space<vmem>>, %arg4: memref<1x128x128xbf16, #tpu.memory_space<vmem>>, %arg5: memref<1x1x1x128xf32, #tpu.memory_space<vmem>>, %arg6: memref<1x128xf32, #tpu.memory_space<vmem>>, %arg7: memref<1x128xf32, #tpu.memory_space<vmem>>, %arg8: memref<1x128xf32, #tpu.memory_space<vmem>>) attributes {dimension_semantics = [#tpu.dimension_semantics<parallel>, #tpu.dimension_semantics<parallel>, #tpu.dimension_semantics<arbitrary>], iteration_bounds = array<i64: 2, 1, 1>, scalar_prefetch = 0 : i64, scratch_operands = 3 : i64, tpu.core_type = #tpu.core_type<tc>, window_params = [{transform_indices = @transform_0, window_bounds = array<i64: 1, 128, 128>}, {transform_indices = @transform_1, window_bounds = array<i64: 1, 128, 128>}, {transform_indices = @transform_2, window_bounds = array<i64: 1, 1, 1, 128>}]} {
    %c0_i32 = arith.constant 0 : i32
    %0 = arith.cmpi eq, %arg2, %c0_i32 : i32
    %1 = arith.extui %0 : i1 to i32
    %c0_i32_0 = arith.constant 0 : i32
    %2 = arith.cmpi ne, %1, %c0_i32_0 : i32
    scf.if %2 {
      %cst_30 = arith.constant 0xFF800000 : f32
      %67 = vector.broadcast %cst_30 : f32 to vector<1x128xf32>
      %c0_31 = arith.constant 0 : index
      %c0_32 = arith.constant 0 : index
      %68 = vector.load %arg6[%c0_31, %c0_32] : memref<1x128xf32, #tpu.memory_space<vmem>>, vector<1x128xf32>
      tpu.vector_store %arg6[%c0_31, %c0_32], %67 {strides = array<i32>} : memref<1x128xf32, #tpu.memory_space<vmem>>, vector<1x128xf32>,
      %cst_33 = arith.constant 0.000000e+00 : f32
      %69 = vector.broadcast %cst_33 : f32 to vector<1x128xf32>
      %c0_34 = arith.constant 0 : index
      %c0_35 = arith.constant 0 : index
      %70 = vector.load %arg7[%c0_34, %c0_35] : memref<1x128xf32, #tpu.memory_space<vmem>>, vector<1x128xf32>
      tpu.vector_store %arg7[%c0_34, %c0_35], %69 {strides = array<i32>} : memref<1x128xf32, #tpu.memory_space<vmem>>, vector<1x128xf32>,
    } else {
    }
    %c0 = arith.constant 0 : index
    %c0_1 = arith.constant 0 : index
    %c0_2 = arith.constant 0 : index
    %3 = vector.load %arg4[%c0, %c0_1, %c0_2] : memref<1x128x128xbf16, #tpu.memory_space<vmem>>, vector<1x128x128xbf16>
    %4 = vector.shape_cast %3 : vector<1x128x128xbf16> to vector<128x128xbf16>
    %c0_3 = arith.constant 0 : index
    %c0_4 = arith.constant 0 : index
    %c0_5 = arith.constant 0 : index
    %5 = vector.load %arg3[%c0_3, %c0_4, %c0_5] : memref<1x128x128xbf16, #tpu.memory_space<vmem>>, vector<1x128x128xbf16>
    %6 = vector.shape_cast %5 : vector<1x128x128xbf16> to vector<128x128xbf16>
    %cst = arith.constant dense<0.000000e+00> : vector<128x128xf32>
    %7 = tpu.matmul %4, %6, %cst {dimension_numbers = #tpu.dot_dimension_numbers<[1], [0], [0], [1], [0, 0, 1, 1], [], []>} : vector<128x128xbf16>, vector<128x128xbf16>, vector<128x128xf32> -> vector<128x128xf32>
    %8 = tpu.iota {dimensions = array<i32: 0>} : vector<128x1xi32>
    %c128_i32 = arith.constant 128 : i32
    %9 = arith.muli %arg2, %c128_i32 : i32
    %10 = vector.broadcast %9 : i32 to vector<128x1xi32>
    %11 = arith.addi %8, %10 : vector<128x1xi32>
    %c8_i32 = arith.constant 8 : i32
    %12 = vector.broadcast %c8_i32 : i32 to vector<128x1xi32>
    %13 = arith.cmpi sge, %11, %12 : vector<128x1xi32>
    %cst_6 = arith.constant -1.000000e+30 : f32
    %14 = vector.shape_cast %13 : vector<128x1xi1> to vector<128x1xi1>
    %15 = vector.broadcast %14 : vector<128x1xi1> to vector<128x128xi1>
    %16 = vector.broadcast %cst_6 : f32 to vector<128x128xf32>
    %17 = arith.select %15, %16, %7 : vector<128x128xi1>, vector<128x128xf32>
    %c1_i32 = arith.constant 1 : i32
    %c0_i32_7 = arith.constant 0 : i32
    %18 = arith.cmpi eq, %c1_i32, %c0_i32_7 : i32
    %c1_i32_8 = arith.constant 1 : i32
    %19 = arith.select %18, %c1_i32_8, %c1_i32 : i32
    %20 = arith.remsi %arg1, %19 : i32
    %c0_i32_9 = arith.constant 0 : i32
    %21 = arith.cmpi ne, %20, %c0_i32_9 : i32
    %c0_i32_10 = arith.constant 0 : i32
    %22 = arith.cmpi slt, %20, %c0_i32_10 : i32
    %c0_i32_11 = arith.constant 0 : i32
    %23 = arith.cmpi slt, %19, %c0_i32_11 : i32
    %24 = arith.xori %22, %23 : i1
    %25 = arith.andi %24, %21 : i1
    %26 = arith.addi %20, %19 : i32
    %27 = arith.select %25, %26, %20 : i32
    %c128_i32_12 = arith.constant 128 : i32
    %28 = arith.muli %27, %c128_i32_12 : i32
    %29 = tpu.iota {dimensions = array<i32: 0>} : vector<128x128xi32>
    %30 = tpu.iota {dimensions = array<i32: 1>} : vector<128x128xi32>
    %31 = vector.broadcast %28 : i32 to vector<128x128xi32>
    %32 = arith.addi %30, %31 : vector<128x128xi32>
    %33 = arith.cmpi eq, %29, %32 : vector<128x128xi32>
    %cst_13 = arith.constant 0.000000e+00 : f32
    %34 = vector.broadcast %cst_13 : f32 to vector<128x128xf32>
    %35 = arith.select %33, %17, %34 : vector<128x128xi1>, vector<128x128xf32>
    %cst_14 = arith.constant dense<0.000000e+00> : vector<128xf32>
    %36 = vector.multi_reduction <add>, %35, %cst_14 [0] : vector<128x128xf32> to vector<128xf32>
    %37 = vector.shape_cast %36 : vector<128xf32> to vector<1x128xf32>
    %c0_15 = arith.constant 0 : index
    %c0_16 = arith.constant 0 : index
    %38 = vector.load %arg8[%c0_15, %c0_16] : memref<1x128xf32, #tpu.memory_space<vmem>>, vector<1x128xf32>
    tpu.vector_store %arg8[%c0_15, %c0_16], %37 {strides = array<i32>} : memref<1x128xf32, #tpu.memory_space<vmem>>, vector<1x128xf32>,
    %cst_17 = arith.constant -142.857147 : f32
    %39 = vector.broadcast %cst_17 : f32 to vector<128x128xf32>
    %40 = arith.select %33, %39, %17 : vector<128x128xi1>, vector<128x128xf32>
    %c0_18 = arith.constant 0 : index
    %c0_19 = arith.constant 0 : index
    %41 = vector.load %arg6[%c0_18, %c0_19] : memref<1x128xf32, #tpu.memory_space<vmem>>, vector<1x128xf32>
    %cst_20 = arith.constant dense<0xFF800000> : vector<128xf32>
    %42 = vector.multi_reduction <maximumf>, %40, %cst_20 [0] : vector<128x128xf32> to vector<128xf32>
    %43 = vector.shape_cast %42 : vector<128xf32> to vector<1x128xf32>
    %44 = arith.maximumf %41, %43 : vector<1x128xf32>
    %c0_21 = arith.constant 0 : index
    %c0_22 = arith.constant 0 : index
    %45 = vector.load %arg7[%c0_21, %c0_22] : memref<1x128xf32, #tpu.memory_space<vmem>>, vector<1x128xf32>
    %46 = arith.subf %41, %44 : vector<1x128xf32>
    %47 = math.exp %46 : vector<1x128xf32>
    %48 = arith.mulf %45, %47 : vector<1x128xf32>
    %49 = vector.broadcast %44 : vector<1x128xf32> to vector<128x128xf32>
    %50 = arith.subf %40, %49 : vector<128x128xf32>
    %51 = math.exp %50 : vector<128x128xf32>
    %cst_23 = arith.constant dense<0.000000e+00> : vector<128xf32>
    %52 = vector.multi_reduction <add>, %51, %cst_23 [0] : vector<128x128xf32> to vector<128xf32>
    %53 = vector.shape_cast %52 : vector<128xf32> to vector<1x128xf32>
    %54 = arith.addf %48, %53 : vector<1x128xf32>
    %55 = arith.maximumf %44, %37 : vector<1x128xf32>
    %56 = arith.subf %44, %55 : vector<1x128xf32>
    %57 = math.exp %56 : vector<1x128xf32>
    %58 = arith.mulf %54, %57 : vector<1x128xf32>
    %59 = arith.subf %37, %55 : vector<1x128xf32>
    %60 = math.exp %59 : vector<1x128xf32>
    %61 = arith.addf %58, %60 : vector<1x128xf32>
    %c0_24 = arith.constant 0 : index
    %c0_25 = arith.constant 0 : index
    %62 = vector.load %arg6[%c0_24, %c0_25] : memref<1x128xf32, #tpu.memory_space<vmem>>, vector<1x128xf32>
    tpu.vector_store %arg6[%c0_24, %c0_25], %55 {strides = array<i32>} : memref<1x128xf32, #tpu.memory_space<vmem>>, vector<1x128xf32>,
    %c0_26 = arith.constant 0 : index
    %c0_27 = arith.constant 0 : index
    %63 = vector.load %arg7[%c0_26, %c0_27] : memref<1x128xf32, #tpu.memory_space<vmem>>, vector<1x128xf32>
    tpu.vector_store %arg7[%c0_26, %c0_27], %61 {strides = array<i32>} : memref<1x128xf32, #tpu.memory_space<vmem>>, vector<1x128xf32>,
    %c0_i32_28 = arith.constant 0 : i32
    %64 = arith.cmpi eq, %arg2, %c0_i32_28 : i32
    %65 = arith.extui %64 : i1 to i32
    %c0_i32_29 = arith.constant 0 : i32
    %66 = arith.cmpi ne, %65, %c0_i32_29 : i32
    scf.if %66 {
      %c0_30 = arith.constant 0 : index
      %c0_31 = arith.constant 0 : index
      %67 = vector.load %arg6[%c0_30, %c0_31] : memref<1x128xf32, #tpu.memory_space<vmem>>, vector<1x128xf32>
      %c0_32 = arith.constant 0 : index
      %c0_33 = arith.constant 0 : index
      %68 = vector.load %arg7[%c0_32, %c0_33] : memref<1x128xf32, #tpu.memory_space<vmem>>, vector<1x128xf32>
      %69 = math.log %68 : vector<1x128xf32>
      %70 = arith.addf %67, %69 : vector<1x128xf32>
      %c0_34 = arith.constant 0 : index
      %c0_35 = arith.constant 0 : index
      %71 = vector.load %arg8[%c0_34, %c0_35] : memref<1x128xf32, #tpu.memory_space<vmem>>, vector<1x128xf32>
      %72 = arith.subf %70, %71 : vector<1x128xf32>
      %cst_36 = arith.constant 1.000000e+00 : f32
      %73 = vector.broadcast %cst_36 : f32 to vector<1x128xf32>
      %74 = arith.mulf %72, %73 : vector<1x128xf32>
      %c0_37 = arith.constant 0 : index
      %c0_38 = arith.constant 0 : index
      %c0_39 = arith.constant 0 : index
      %c0_40 = arith.constant 0 : index
      %75 = vector.load %arg5[%c0_37, %c0_38, %c0_39, %c0_40] : memref<1x1x1x128xf32, #tpu.memory_space<vmem>>, vector<1x1x1x128xf32>
      %76 = vector.shape_cast %75 : vector<1x1x1x128xf32> to vector<1x128xf32>
      %77 = vector.shape_cast %74 : vector<1x128xf32> to vector<1x1x1x128xf32>
      tpu.vector_store %arg5[%c0_37, %c0_38, %c0_39, %c0_40], %77 {strides = array<i32>} : memref<1x1x1x128xf32, #tpu.memory_space<vmem>>, vector<1x1x1x128xf32>,
    } else {
    }
    return
  }
  func.func @transform_0(%arg0: i32, %arg1: i32, %arg2: i32) -> (i32, i32, i32) {
    %c0_i32 = arith.constant 0 : i32
    %c0_i32_0 = arith.constant 0 : i32
    return %arg0, %c0_i32, %arg1 : i32, i32, i32
  }
  func.func @transform_1(%arg0: i32, %arg1: i32, %arg2: i32) -> (i32, i32, i32) {
    %c0_i32 = arith.constant 0 : i32
    %c0_i32_0 = arith.constant 0 : i32
    return %arg0, %arg2, %c0_i32 : i32, i32, i32
  }
  func.func @transform_2(%arg0: i32, %arg1: i32, %arg2: i32) -> (i32, i32, i32, i32) {
    %c0_i32 = arith.constant 0 : i32
    %c0_i32_0 = arith.constant 0 : i32
    %c0_i32_1 = arith.constant 0 : i32
    return %arg0, %arg1, %c0_i32, %c0_i32_0 : i32, i32, i32, i32
  }
}

</mosaic_0001>

<bundles_post_ra>
// kernel: patch_nce_loss.1
= control target key start
LH: loop header
LB: loop body
LE: loop exit
PB: predicated region body
PF: predicated region fallthrough
CT: control target
= control target key end

     0   :  { %s1053_s9 = smov 0   ;;  %s1055_s10 = smov 0   ;;  %s1394_s0 = inlined_call_operand.vmem [shape: bf16[2,128,128], index: 0, kind: input, shape index: {}]   ;;  %s1395_s1 = inlined_call_operand.vmem [shape: bf16[2,128,128], index: 1, kind: input, shape index: {}]   ;;  %s1396_s2 = inlined_call_operand.vmem [shape: f32[2,1,1,128], index: 2, kind: output, shape index: {}]  }
   0x1   :  { %s1057_s11 = smov 0  }
   0x2 LB: > { %s31_s12 = sadd.s32 1, %s1029_s10  ;;  %p839_p0 = scmp.ge.s32.totalorder %s1033_s11, 1  ;;  %s1033_s11 = sphi %s1057_s11, %s12_s11   ;;  %s1029_s10 = sphi %s1055_s10, %s1398_s10   ;;  %s1025_s9 = sphi %s1053_s9, %s1397_s9  }
   0x3   : > { %p33_p1 = scmp.ge.s32.totalorder %s31_s12, 2  ;;  %p155_p2 = scmp.lt.s32.totalorder %s1033_s11, 3 }
   0x5   : > { %s1400_s12 = smov (%p33_p1, %s31_s12), 0  ;;  %p156_p3 = pnand %p839_p0, %p155_p2 }
   0x6   : > { %p190_p4 = scmp.lt.s32.totalorder (!%p156_p3), %s1025_s9, 1 }
   0x7   : > { %159 = sbr.rel (%p156_p3) target bundleno = 366 (0x16e), region = 28 }
   0xc   : > { %s1402_s9 = smov (!%p190_p4, %s1025_s9), 1  ;;  %v1035_v16 = vmov -inf   ;;  %v1036_v17 = vmov 0.0   ;;  %v446_v18 = vlaneseq  ;;  %v1037_v31 = vmov -1e+30  }
   0xd   : > { %s862_s13 = sshll.u32 %s1402_s9, 6  ;;  %219 = vst [vmem:[#allocation2] sm:$0x1] %v1035_v16  ;;  %220 = vst [vmem:[#allocation3] sm:$0x1] %v1036_v17  ;;  %s213_s22 = scalar_lea.vmem %s1396_s2, %s1402_s9 }
   0xe   : > { %s1077_s16 = scalar_lea.vmem %s1394_s0, %s862_s13  ;;  %s1085_s19 = scalar_lea.vmem %s1395_s1, %s862_s13  ;;  %v1101_v19 = vshrl.u32 %v446_v18, 7  ;;  %v1104_v21 = vand.u32 127, %v446_v18 }
   0xf   : > { %v955_v0 = vld [vmem:[%s1077_s16 + $0x38] sm:$0xff]   ;;  %v956_v1 = vld [vmem:[%s1077_s16 + $0x30] sm:$0xff]   ;;  %v957_v2 = vld [vmem:[%s1077_s16 + $0x28] sm:$0xff]  }
  0x10   : > { %880 = vmatprep.subr.bf16.mxu0 %v955_v0  ;;  %912 = vmatprep.subr.bf16.mxu1 %v955_v0  ;;  %v958_v3 = vld [vmem:[%s1077_s16 + $0x20] sm:$0xff]   ;;  %v959_v6 = vld [vmem:[%s1077_s16 + $0x18] sm:$0xff]   ;;  %v960_v7 = vld [vmem:[%s1077_s16 + $0x10] sm:$0xff]   ;;  %v449_v20 = vadd.s32 16, %v1101_v19  ;;  %v1107_v22 = vadd.s32 24, %v1101_v19  ;;  %v1110_v23 = vadd.s32 48, %v1101_v19  ;;  %vm547_vm12 = vcmp.eq.s32.totalorder %v1101_v19, %v1104_v21 }
  0x11   : > { %881 = vmatpush3.bf16.msra.mxu0 %v955_v0  ;;  %920 = vmatpush3.bf16.msra.mxu1 %v955_v0  ;;  %v963_v4 = vld [vmem:[%s1085_s19] sm:$0xff]   ;;  %v961_v8 = vld [vmem:[%s1077_s16 + $0x8] sm:$0xff]   ;;  %v967_v12 = vld [vmem:[%s1085_s19 + $0x10] sm:$0xff]   ;;  %v1113_v24 = vadd.s32 56, %v1101_v19  ;;  %v448_v25 = vadd.s32 8, %v1101_v19  ;;  %v1117_v26 = vadd.s32 40, %v1101_v19 }
  0x12   : > { %882 = vmatprep.subr.bf16.mxu0 %v956_v1  ;;  %913 = vmatprep.subr.bf16.mxu1 %v956_v1  ;;  %v965_v5 = vld [vmem:[%s1085_s19 + $0x20] sm:$0xff]   ;;  %v964_v10 = vld [vmem:[%s1085_s19 + $0x8] sm:$0xff]   ;;  %v968_v13 = vld [vmem:[%s1085_s19 + $0x30] sm:$0xff]   ;;  %v1120_v27 = vadd.s32 80, %v1101_v19  ;;  %vm549_vm0 = vcmp.eq.s32.totalorder %v449_v20, %v1104_v21  ;;  %v1124_v28 = vadd.s32 88, %v1101_v19  ;;  %vm550_vm1 = vcmp.eq.s32.totalorder %v1107_v22, %v1104_v21 }
  0x13   : > { %896 = vmatprep.mubr.bf16.mxu0 %v963_v4  ;;  %904 = vmatprep.mubr.bf16.mxu1 %v965_v5  ;;  %v962_v9 = vld [vmem:[%s1077_s16] sm:$0xff]   ;;  %v966_v11 = vld [vmem:[%s1085_s19 + $0x28] sm:$0xff]   ;;  %v969_v14 = vld [vmem:[%s1085_s19 + $0x18] sm:$0xff]   ;;  %vm553_vm2 = vcmp.eq.s32.totalorder %v1110_v23, %v1104_v21  ;;  %vm554_vm3 = vcmp.eq.s32.totalorder %v1113_v24, %v1104_v21  ;;  %v451_v29 = vadd.s32 32, %v1101_v19  ;;  %v1134_v30 = vadd.s32 72, %v1101_v19 }
  0x14   : > { %v970_v15 = vld [vmem:[%s1085_s19 + $0x38] sm:$0xff]   ;;  %vm548_vm4 = vcmp.eq.s32.totalorder %v448_v25, %v1104_v21  ;;  %vm552_vm5 = vcmp.eq.s32.totalorder %v1117_v26, %v1104_v21  ;;  %v1141_v32 = vsel %vm549_vm0, -142.85715, %v1037_v31  ;;  %v1146_v33 = vsel %vm550_vm1, -142.85715, %v1037_v31 }
  0x15   : > { %883 = vmatpush3.bf16.msra.mxu0 %v956_v1  ;;  %921 = vmatpush3.bf16.msra.mxu1 %v956_v1  ;;  %v1151_v34 = vsel %vm553_vm2, -142.85715, %v1037_v31  ;;  %v1156_v35 = vsel %vm554_vm3, -142.85715, %v1037_v31  ;;  %v1159_v36 = vadd.s32 112, %v1101_v19  ;;  %v1162_v37 = vadd.s32 120, %v1101_v19 }
  0x16   : > { %884 = vmatprep.subr.bf16.mxu0 %v957_v2  ;;  %914 = vmatprep.subr.bf16.mxu1 %v957_v2  ;;  %vm557_vm6 = vcmp.eq.s32.totalorder %v1120_v27, %v1104_v21  ;;  %vm558_vm7 = vcmp.eq.s32.totalorder %v1124_v28, %v1104_v21  ;;  %v1169_v38 = vadd.s32 64, %v1101_v19  ;;  %v1173_v39 = vsel %vm548_vm4, -142.85715, %v1037_v31 }
  0x17   : > { %v1178_v40 = vsel %vm552_vm5, -142.85715, %v1037_v31  ;;  %v1181_v41 = vadd.s32 104, %v1101_v19  ;;  %vm556_vm8 = vcmp.eq.s32.totalorder %v1134_v30, %v1104_v21  ;;  %v620_v42 = vmax.f32 %v1141_v32, %v1151_v34 }
  0x18   : > { %v621_v43 = vmax.f32 %v1146_v33, %v1156_v35  ;;  %v1190_v44 = vadd.s32 96, %v1101_v19  ;;  %v1195_v45 = vsel %vm557_vm6, -142.85715, %v1037_v31  ;;  %v1200_v46 = vsel %vm558_vm7, -142.85715, %v1037_v31 }
  0x19   : > { %885 = vmatpush3.bf16.msra.mxu0 %v957_v2  ;;  %922 = vmatpush3.bf16.msra.mxu1 %v957_v2  ;;  %vm551_vm9 = vcmp.eq.s32.totalorder %v451_v29, %v1104_v21  ;;  %vm561_vm10 = vcmp.eq.s32.totalorder %v1159_v36, %v1104_v21  ;;  %vm562_vm11 = vcmp.eq.s32.totalorder %v1162_v37, %v1104_v21  ;;  %v1216_v48 = vsel %vm556_vm8, -142.85715, %v1037_v31 }
  0x1a   : > { %886 = vmatprep.subr.bf16.mxu0 %v958_v3  ;;  %915 = vmatprep.subr.bf16.mxu1 %v958_v3  ;;  %v619_v47 = vmax.f32 %v1173_v39, %v1178_v40  ;;  %vm555_vm13 = vcmp.eq.s32.totalorder %v1169_v38, %v1104_v21  ;;  %vm560_vm14 = vcmp.eq.s32.totalorder %v1181_v41, %v1104_v21  ;;  %v564_v50 = vsel %vm548_vm4, -1e+30, %v1036_v17 }
  0x1b   : > { %v624_v51 = vmax.f32 %v620_v42, %v1195_v45  ;;  %v625_v52 = vmax.f32 %v621_v43, %v1200_v46  ;;  %v1227_v54 = vsel %vm551_vm9, -142.85715, %v1037_v31  ;;  %v1232_v55 = vsel %vm561_vm10, -142.85715, %v1037_v31 }
  0x1c   : > { %v1237_v56 = vsel %vm562_vm11, -142.85715, %v1037_v31  ;;  %vm559_vm15 = vcmp.eq.s32.totalorder %v1190_v44, %v1104_v21  ;;  %v565_v58 = vsel %vm549_vm0, -1e+30, %v1036_v17  ;;  %v1247_v59 = vsel %vm555_vm13, -142.85715, %v1037_v31 }
  0x1d   : > { %887 = vmatpush3.bf16.msra.mxu0 %v958_v3  ;;  %923 = vmatpush3.bf16.msra.mxu1 %v958_v3  ;;  %v623_v60 = vmax.f32 %v619_v47, %v1216_v48  ;;  %v1261_v0 = vsel %vm560_vm14, -142.85715, %v1037_v31  ;;  %v628_v3 = vmax.f32 %v624_v51, %v1232_v55  ;;  %v629_v4 = vmax.f32 %v625_v52, %v1237_v56 }
  0x1e   : > { %888 = vmatprep.subr.bf16.mxu0 %v959_v6  ;;  %916 = vmatprep.subr.bf16.mxu1 %v959_v6  ;;  %v568_v25 = vsel %vm552_vm5, -1e+30, %v1036_v17  ;;  %v569_v29 = vsel %vm553_vm2, -1e+30, %v1036_v17  ;;  %v573_v24 = vsel %vm557_vm6, -1e+30, %v1036_v17 }
  0x1f   : > { %v631_v18 = vmax.f32 %v628_v3, %v629_v4  ;;  %v574_v38 = vsel %vm558_vm7, -1e+30, %v1036_v17  ;;  %v575_v30 = vsel %vm559_vm15, -1e+30, %v1036_v17  ;;  %v648_v27 = vsub.s32 0, %v1101_v19 }
  0x20   : > { %v577_v44 = vsel %vm561_vm10, -1e+30, %v1036_v17  ;;  %v578_v19 = vsel %vm562_vm11, -1e+30, %v1036_v17 }
  0x21   : > { %889 = vmatpush3.bf16.msra.mxu0 %v959_v6  ;;  %924 = vmatpush3.bf16.msra.mxu1 %v959_v6 }
  0x22   : > { %890 = vmatprep.subr.bf16.mxu0 %v960_v7  ;;  %917 = vmatprep.subr.bf16.mxu1 %v960_v7 }
  0x25   : > { %891 = vmatpush3.bf16.msra.mxu0 %v960_v7  ;;  %925 = vmatpush3.bf16.msra.mxu1 %v960_v7  ;;  %v566_v7 = vsel %vm550_vm1, -1e+30, %v1036_v17 }
  0x26   : > { %892 = vmatprep.subr.bf16.mxu0 %v961_v8  ;;  %918 = vmatprep.subr.bf16.mxu1 %v961_v8 }
  0x29   : > { %893 = vmatpush3.bf16.msra.mxu0 %v961_v8  ;;  %926 = vmatpush3.bf16.msra.mxu1 %v961_v8  ;;  %v1274_v8 = vsel %vm559_vm15, -142.85715, %v1037_v31 }
  0x2a   : > { %894 = vmatprep.subr.bf16.mxu0 %v962_v9  ;;  %919 = vmatprep.subr.bf16.mxu1 %v962_v9 }
  0x2d   : > { %895 = vmatpush3.bf16.msra.mxu0 %v962_v9  ;;  %927 = vmatpush3.bf16.msra.mxu1 %v962_v9 }
  0x30   : > { %897 = vmatmul.mubr.bf16.vlgmr.msra.gmra.mxu0 %v964_v10  ;;  %905 = vmatmul.mubr.bf16.vlgmr.msra.gmra.mxu1 %v966_v11  ;;  %v627_v11 = vmax.f32 %v623_v60, %v1261_v0 }
  0x31   : > { %900 = vmatprep.mubr.bf16.mxu0 %v967_v12  ;;  %908 = vmatprep.mubr.bf16.mxu1 %v968_v13 }
  0x38   : > { %901 = vmatmul.mubr.bf16.gmra.mxu0 %v969_v14  ;;  %909 = vmatmul.mubr.bf16.gmra.mxu1 %v970_v15  ;;  %v567_v14 = vsel %vm551_vm9, -1e+30, %v1036_v17 }
  0xf0   : > { %v898_v49 = vpop.f32.mrf.mxu0  ;;  %v906_v53 = vpop.f32.mrf.mxu1 }
  0xf1   : > { %v570_v53 = vsel %vm554_vm3, -1e+30, %v1036_v17 }
  0xf2   : > { %v383_v57 = vpop.f32.mrf.mxu0  ;;  %v415_v61 = vpop.f32.mrf.mxu1 }
  0xf3   : > { %v563_v62 = vsel %vm547_vm12, %v383_v57, 0.0  ;;  %v1256_v63 = vsel %vm547_vm12, -142.85715, %v383_v57  ;;  %v571_v61 = vsel %vm555_vm13, -1e+30, %v1036_v17 }
  0xf4   : > { %v579_v1 = vadd.f32 %v564_v50, %v563_v62  ;;  %v618_v2 = vmax.f32 %v1256_v63, %v1227_v54  ;;  %v899_v5 = vpop.f32.mrf.mxu0  ;;  %v907_v6 = vpop.f32.mrf.mxu1 }
  0xf6   : > { %v580_v9 = vadd.f32 %v579_v1, %v565_v58  ;;  %v622_v10 = vmax.f32 %v618_v2, %v1247_v59  ;;  %v386_v12 = vpop.f32.mrf.mxu0  ;;  %v418_v13 = vpop.f32.mrf.mxu1  ;;  %v572_v1 = vsel %vm556_vm8, -1e+30, %v1036_v17 }
  0xf7   : > { %v576_v12 = vsel %vm560_vm14, -1e+30, %v1036_v17 }
  0xf8   : > { %v581_v15 = vadd.f32 %v580_v9, %v566_v7  ;;  %v626_v16 = vmax.f32 %v622_v10, %v1274_v8  ;;  %v902_v20 = vpop.f32.mrf.mxu0  ;;  %v910_v22 = vpop.f32.mrf.mxu1  ;;  %v1314_v9 = vld [vmem:[#allocation2] sm:$0x1] }
  0xfa   : > { %v582_v31 = vadd.f32 %v581_v15, %v567_v14  ;;  %v630_v42 = vmax.f32 %v626_v16, %v627_v11  ;;  %v399_v43 = vpop.f32.mrf.mxu0  ;;  %v431_v47 = vpop.f32.mrf.mxu1 }
  0xfc   : > { %v583_v49 = vadd.f32 %v582_v31, %v568_v25  ;;  %v632_v50 = vmax.f32 %v630_v42, %v631_v18  ;;  %v903_v51 = vpop.f32.mrf.mxu0  ;;  %v911_v52 = vpop.f32.mrf.mxu1 }
  0xfe   : > { %v584_v26 = vadd.f32 %v583_v49, %v569_v29  ;;  %v633_v57 = vrot.slane %v632_v50, 4  ;;  %v402_v58 = vpop.f32.mrf.mxu0  ;;  %v434_v60 = vpop.f32.mrf.mxu1 }
 0x100   : > { %v585_v23 = vadd.f32 %v584_v26, %v570_v53  ;;  %v634_v62 = vmax.f32 %v632_v50, %v633_v57 }
 0x102   : > { %v586_v2 = vadd.f32 %v585_v23, %v571_v61  ;;  %v635_v3 = vrot.slane %v634_v62, 2 }
 0x104   : > { %v587_v4 = vadd.f32 %v586_v2, %v572_v1  ;;  %v636_v5 = vmax.f32 %v634_v62, %v635_v3 }
 0x106   : > { %v588_v6 = vadd.f32 %v587_v4, %v573_v24  ;;  %v637_v7 = vrot.slane %v636_v5, 1 }
 0x108   : > { %v589_v10 = vadd.f32 %v588_v6, %v574_v38  ;;  %v638_v11 = vmax.f32 %v636_v5, %v637_v7 }
 0x10a   : > { %v590_v28 = vadd.f32 %v589_v10, %v575_v30  ;;  %v1322_v13 = vmax.f32 %v1314_v9, %v638_v11 }
 0x10c   : > { %v591_v14 = vadd.f32 %v590_v28, %v576_v12  ;;  %v1329_v15 = vrot.slane %v1322_v13, %v648_v27 }
 0x10e   : > { %v592_v41 = vadd.f32 %v591_v14, %v577_v44  ;;  %v651_v16 = vsub.f32 %v1256_v63, %v1329_v15  ;;  %v652_v18 = vsub.f32 %v1173_v39, %v1329_v15  ;;  %v653_v36 = vsub.f32 %v1141_v32, %v1329_v15 }
 0x10f   : > { %v654_v25 = vsub.f32 %v1146_v33, %v1329_v15  ;;  %v655_v17 = vsub.f32 %v1227_v54, %v1329_v15  ;;  %v656_v39 = vsub.f32 %v1178_v40, %v1329_v15  ;;  %v657_v32 = vsub.f32 %v1151_v34, %v1329_v15 }
 0x110   : > { %v593_v20 = vadd.f32 %v592_v41, %v578_v19  ;;  %v667_v31 = vmul.f32 1.442695, %v651_v16  ;;  %v669_v42 = vmul.f32 1.442695, %v652_v18  ;;  %v671_v21 = vmul.f32 1.442695, %v653_v36 }
 0x111   : > { %v673_v63 = vmul.f32 1.442695, %v654_v25  ;;  %v675_v33 = vmul.f32 1.442695, %v655_v17  ;;  %v658_v49 = vsub.f32 %v1156_v35, %v1329_v15  ;;  %v677_v54 = vmul.f32 1.442695, %v656_v39 }
 0x112   : > { %v594_v22 = vrot.slane %v593_v20, 4  ;;  %971 = vpow2.f32 %v667_v31  ;;  %v659_v51 = vsub.f32 %v1247_v59, %v1329_v15  ;;  %v679_v40 = vmul.f32 1.442695, %v657_v32 }
 0x113   : > { %973 = vpow2.f32 %v669_v42  ;;  %v660_v34 = vsub.f32 %v1216_v48, %v1329_v15  ;;  %v681_v52 = vmul.f32 1.442695, %v658_v49  ;;  %v661_v35 = vsub.f32 %v1195_v45, %v1329_v15 }
 0x114   : > { %v595_v43 = vadd.f32 %v594_v22, %v593_v20  ;;  %975 = vpow2.f32 %v671_v21  ;;  %v683_v26 = vmul.f32 1.442695, %v659_v51  ;;  %v662_v57 = vsub.f32 %v1200_v46, %v1329_v15 }
 0x115   : > { %977 = vpow2.f32 %v673_v63  ;;  %v685_v58 = vmul.f32 1.442695, %v660_v34  ;;  %v663_v60 = vsub.f32 %v1274_v8, %v1329_v15  ;;  %v687_v61 = vmul.f32 1.442695, %v661_v35 }
 0x116   : > { %v596_v37 = vrot.slane %v595_v43, 2  ;;  %979 = vpow2.f32 %v675_v33  ;;  %v664_v45 = vsub.f32 %v1261_v0, %v1329_v15  ;;  %v689_v1 = vmul.f32 1.442695, %v662_v57 }
 0x117   : > { %981 = vpow2.f32 %v677_v54  ;;  %v665_v46 = vsub.f32 %v1232_v55, %v1329_v15  ;;  %v691_v24 = vmul.f32 1.442695, %v663_v60  ;;  %v666_v8 = vsub.f32 %v1237_v56, %v1329_v15 }
 0x118   : > { %v597_v47 = vadd.f32 %v596_v37, %v595_v43  ;;  %983 = vpow2.f32 %v679_v40  ;;  %v693_v38 = vmul.f32 1.442695, %v664_v45  ;;  %v641_v56 = vsub.f32 %v1314_v9, %v1322_v13 }
 0x119   : > { %985 = vpow2.f32 %v681_v52  ;;  %v695_v0 = vmul.f32 1.442695, %v665_v46  ;;  %v697_v11 = vmul.f32 1.442695, %v666_v8 }
 0x11a   : > { %v598_v29 = vrot.slane %v597_v47, 1  ;;  %987 = vpow2.f32 %v683_v26  ;;  %v642_v18 = vmul.f32 1.442695, %v641_v56 }
 0x11b   : > { %989 = vpow2.f32 %v685_v58 }
 0x11c   : > { %v1351_v50 = vadd.f32 %v598_v29, %v597_v47  ;;  %991 = vpow2.f32 %v687_v61 }
 0x11d   : > { %993 = vpow2.f32 %v689_v1 }
 0x11e   : > { %600 = vst [vmem:[#allocation4] sm:$0x1] %v1351_v50  ;;  %v1360_v53 = vmax.f32 %v1322_v13, %v1351_v50  ;;  %995 = vpow2.f32 %v691_v24 }
 0x11f   : > { %v972_v59 = vpop.eup %971  ;;  %997 = vpow2.f32 %v693_v38 }
 0x120   : > { %730 = vst [vmem:[#allocation2] sm:$0x1] %v1360_v53  ;;  %v974_v48 = vpop.eup %973  ;;  %999 = vpow2.f32 %v695_v0  ;;  %v722_v25 = vsub.f32 %v1322_v13, %v1360_v53  ;;  %v726_v43 = vsub.f32 %v1351_v50, %v1360_v53  ;;  %v640_v13 = vld [vmem:[#allocation3] sm:$0x1] }
 0x121   : > { %v699_v23 = vadd.f32 %v974_v48, %v972_v59  ;;  %v976_v62 = vpop.eup %975  ;;  %1001 = vpow2.f32 %v697_v11 }
 0x122   : > { %v978_v3 = vpop.eup %977  ;;  %1003 = vpow2.f32 %v642_v18  ;;  %v723_v9 = vmul.f32 1.442695, %v722_v25  ;;  %v727_v63 = vmul.f32 1.442695, %v726_v43 }
 0x123   : > { %v700_v2 = vadd.f32 %v976_v62, %v699_v23  ;;  %v980_v5 = vpop.eup %979 }
 0x124   : > { %v982_v7 = vpop.eup %981  ;;  %1005 = vpow2.f32 %v723_v9 }
 0x125   : > { %v701_v4 = vadd.f32 %v978_v3, %v700_v2  ;;  %v984_v10 = vpop.eup %983  ;;  %1007 = vpow2.f32 %v727_v63  ;;  %v740_v60 = vld [vmem:[#allocation4] sm:$0x1] }
 0x126   : > { %v986_v12 = vpop.eup %985 }
 0x127   : > { %v702_v6 = vadd.f32 %v980_v5, %v701_v4  ;;  %v988_v28 = vpop.eup %987  ;;  %v735_v58 = vld [vmem:[#allocation2] sm:$0x1] }
 0x128   : > { %v990_v14 = vpop.eup %989 }
 0x129   : > { %v703_v30 = vadd.f32 %v982_v7, %v702_v6  ;;  %v992_v19 = vpop.eup %991 }
 0x12a   : > { %v994_v16 = vpop.eup %993 }
 0x12b   : > { %v704_v27 = vadd.f32 %v984_v10, %v703_v30  ;;  %v996_v36 = vpop.eup %995 }
 0x12c   : > { %v998_v31 = vpop.eup %997 }
 0x12d   : > { %v705_v55 = vadd.f32 %v986_v12, %v704_v27  ;;  %v1000_v17 = vpop.eup %999 }
 0x12e   : > { %v1002_v37 = vpop.eup %1001 }
 0x12f   : > { %v706_v44 = vadd.f32 %v988_v28, %v705_v55  ;;  %v1004_v49 = vpop.eup %1003 }
 0x130   : > { %v644_v51 = vmul.f32 %v1004_v49, %v640_v13 }
 0x131   : > { %v707_v15 = vadd.f32 %v990_v14, %v706_v44  ;;  %v1006_v50 = vpop.eup %1005 }
 0x132   : > { %v1008_v53 = vpop.eup %1007 }
 0x133   : > { %v708_v41 = vadd.f32 %v992_v19, %v707_v15 }
 0x135   : > { %v709_v20 = vadd.f32 %v994_v16, %v708_v41 }
 0x137   : > { %v710_v22 = vadd.f32 %v996_v36, %v709_v20 }
 0x139   : > { %v711_v42 = vadd.f32 %v998_v31, %v710_v22 }
 0x13b   : > { %v712_v21 = vadd.f32 %v1000_v17, %v711_v42 }
 0x13d   : > { %v713_v39 = vadd.f32 %v1002_v37, %v712_v21 }
 0x13f   : > { %v714_v47 = vrot.slane %v713_v39, 4 }
 0x141   : > { %v715_v32 = vadd.f32 %v714_v47, %v713_v39 }
 0x143   : > { %v716_v33 = vrot.slane %v715_v32, 2 }
 0x145   : > { %v717_v29 = vadd.f32 %v716_v33, %v715_v32 }
 0x147   : > { %v718_v54 = vrot.slane %v717_v29, 1 }
 0x149   : > { %v719_v40 = vadd.f32 %v718_v54, %v717_v29 }
 0x14b   : > { %v720_v34 = vadd.f32 %v719_v40, %v644_v51 }
 0x14d   : > { %v725_v52 = vmul.f32 %v1006_v50, %v720_v34 }
 0x14f   : > { %v729_v35 = vadd.f32 %v1008_v53, %v725_v52 }
 0x151   : > { %731 = vst [vmem:[#allocation3] sm:$0x1] %v729_v35 }
 0x158   : > { %v736_v26 = vld [vmem:[#allocation3] sm:$0x1] }
 0x159   : > { %1009 = vlog2.f32 %v736_v26 }
 0x166   : > { %v1010_v59 = vpop.eup %1009 }
 0x167   : > { %v738_v57 = vmul.f32 0.6931472, %v1010_v59 }
 0x169   : > { %v739_v48 = vadd.f32 %v738_v57, %v735_v58 }
 0x16b   : > { %v741_v61 = vsub.f32 %v739_v48, %v740_v60 }
 0x16d   : > { %742 = vst [vmem:[%s213_s22] sm:$0x1] %v741_v61 }
 0x16e PF: > { %s12_s11 = sadd.s32 1, %s1033_s11   ;;  %s1397_s9 = smov %s1029_s10 }
 0x16f   : > { %p9_p5 = scmp.ge.s32.totalorder %s12_s11, 4   ;;  %s1398_s10 = smov %s1400_s12 }
 0x171   :  { %11 = sbr.rel (!%p9_p5) target bundleno = 2 (0x2), region = 69 }

</bundles_post_ra>
